<compile_context>
chip_gen: v7x
topology: tpu7x:2x2x1
jax: 0.10.0
libtpu: 0.0.40
codegen_flags: <defaults>
</compile_context>

<pallas_src>
import functools

import jax
import jax.numpy as jnp
import numpy as np
from jax.experimental import pallas as pl
from jax.experimental.pallas import tpu as pltpu

TEMPERATURE = 1.0
BN_EPS = 1e-5


def _round_up(x, m):
    return (x + m - 1) // m * m


def _aau_kernel(x_ref, fcrep_ref, bsel_ref, gamma_ref, beta_ref,
                wall_ref, ball_ref, out_ref, pool_acc,
                *, hw_total, k_off, k_num, inv_temperature):
    step = pl.program_id(0)

    # ---- init persistent pooled-sum accumulator on the first spatial tile ----
    @pl.when(step == 0)
    def _():
        pool_acc[...] = jnp.zeros_like(pool_acc)

    # ---- running spatial sum for this tile: (R, hw_tile) -> (R, 1) ----
    x = x_ref[...].astype(jnp.float32)
    pool_acc[...] += jnp.sum(x, axis=-1, keepdims=True)

    # ---- finalize on the last spatial tile ----
    @pl.when(step == pl.num_programs(0) - 1)
    def _():
        # avgpool: divide the accumulated sum by the TRUE H*W (padding is 0).
        pooled = pool_acc[...] * (1.0 / hw_total)                   # (R, 1)

        # fc (1x1 conv, no bias):  y[b,a] = sum_c pooled[b,c] * fc_w[c,a]
        # expressed as B_sel @ (pooled_col * fc_w_rep) to avoid any in-kernel
        # (R,1)->(B,C_in) relayout.
        y = jnp.dot(bsel_ref[...], pooled * fcrep_ref[...],
                    preferred_element_type=jnp.float32)             # (B, A)

        # BatchNorm2d, training-mode batch stats (spatial dims are 1x1 so the
        # stats reduce over the batch axis only; biased variance), + affine.
        mu = jnp.mean(y, axis=0, keepdims=True)
        var = jnp.mean((y - mu) * (y - mu), axis=0, keepdims=True)
        y = (y - mu) * jax.lax.rsqrt(var + BN_EPS)
        y = y * gamma_ref[...] + beta_ref[...]

        # ReLU
        y = jnp.maximum(y, 0.0)

        # fused heads: single lane-dense matmul over [cw | fw | sw | kw].
        z = (jnp.dot(y, wall_ref[...], preferred_element_type=jnp.float32)
             + ball_ref[...]) * inv_temperature                     # (B, Dpad)

        sig = jax.nn.sigmoid(z)                                     # heads 1-3

        # kernel head: masked softmax over its K lanes.
        col = jax.lax.broadcasted_iota(jnp.int32, z.shape, 1)
        kmask = (col >= k_off) & (col < k_off + k_num)
        zk = jnp.where(kmask, z, -1e30)
        m = jnp.max(zk, axis=-1, keepdims=True)
        e = jnp.exp(zk - m)                                         # 0 off-mask
        denom = jnp.sum(e, axis=-1, keepdims=True)
        soft = e * pl.reciprocal(denom, approx=True)

        # single lane-dense store (Dpad is a multiple of 128).
        out_ref[...] = jnp.where(kmask, soft, sig)


def adaptive_attention_unit(x, params, *, kernel_size, kernel_num, hw_tile=None):
    """x: (B, C_in, H, W) float32, NCHW.  Returns the 4 attention tensors."""
    B, C_in, H, W = x.shape
    HW = H * W
    R = B * C_in

    (fc_w, gamma, beta, cw, cb, fw, fb, sw, sb, kw, kb) = params
    A = fc_w.shape[1]
    C_out = fw.shape[1]
    KK = kernel_size * kernel_size
    K = kernel_num

    # ---- fuse the 4 head weights into one lane-dense (A, D_pad) matrix ----
    D_total = C_in + C_out + KK + K
    D_pad = _round_up(D_total, 128)
    W_all = jnp.concatenate([cw, fw, sw, kw], axis=1)              # (A, D_total)
    b_all = jnp.concatenate([cb, fb, sb, kb], axis=1)              # (1, D_total)
    if D_pad > D_total:
        W_all = jnp.pad(W_all, ((0, 0), (0, D_pad - D_total)))
        b_all = jnp.pad(b_all, ((0, 0), (0, D_pad - D_total)))

    # ---- pooled->fc helpers: row-replicated fc weight + 0/1 batch selector ----
    fc_w_rep = jnp.tile(fc_w, (B, 1))                               # (R, A)
    b_sel = (jnp.arange(R)[None, :] // C_in
             == jnp.arange(B)[:, None]).astype(jnp.float32)        # (B, R)

    # ---- x as 2D (R, HW), spatial axis padded to a multiple of hw_tile ----
    # TODO(synk): for very large B*C_in also tile the row axis (2-D grid); the
    #             1-D spatial grid below assumes R rows fit a few-MiB tile.
    if hw_tile is None:
        per_buf_budget = 8 * 1024 * 1024          # keep 2x double-buffer << 64 MiB (v7x)
        hw_tile = max(128, (per_buf_budget // (max(R, 1) * 4)) // 128 * 128)
        hw_tile = min(hw_tile, 2048, _round_up(HW, 128))
    hw_tile = max(128, (hw_tile // 128) * 128)
    HW_pad = _round_up(HW, hw_tile)
    x2d = x.reshape(R, HW).astype(jnp.float32)
    if HW_pad > HW:
        x2d = jnp.pad(x2d, ((0, 0), (0, HW_pad - HW)))              # zeros: no effect on sum
    num_tiles = HW_pad // hw_tile

    kernel = functools.partial(
        _aau_kernel,
        hw_total=float(HW),
        k_off=C_in + C_out + KK,
        k_num=K,
        inv_temperature=1.0 / TEMPERATURE,
    )

    cost = pl.CostEstimate(
        flops=2 * R * HW_pad + 2 * B * R * A + 2 * B * A * D_pad,
        transcendentals=2 * B * D_pad,
        bytes_accessed=(x2d.size + fc_w_rep.size + b_sel.size + W_all.size
                        + b_all.size + gamma.size + beta.size + B * D_pad) * 4,
    )

    out_padded = pl.pallas_call(
        kernel,
        out_shape=jax.ShapeDtypeStruct((B, D_pad), jnp.float32),
        grid_spec=pltpu.PrefetchScalarGridSpec(
            num_scalar_prefetch=0,
            grid=(num_tiles,),
            in_specs=[
                # x: tiled along the spatial axis (lane-dense, pipelined DMA)
                pl.BlockSpec((R, hw_tile), lambda i: (0, i)),
                # weights / biases: constant block index -> loaded once, resident
                pl.BlockSpec((R, A), lambda i: (0, 0)),
                pl.BlockSpec((B, R), lambda i: (0, 0)),
                pl.BlockSpec((1, A), lambda i: (0, 0)),
                pl.BlockSpec((1, A), lambda i: (0, 0)),
                pl.BlockSpec((A, D_pad), lambda i: (0, 0)),
                pl.BlockSpec((1, D_pad), lambda i: (0, 0)),
            ],
            out_specs=pl.BlockSpec((B, D_pad), lambda i: (0, 0)),
            scratch_shapes=[pltpu.VMEM((R, 1), jnp.float32)],       # pooled-sum acc
        ),
        compiler_params=pltpu.CompilerParams(
            dimension_semantics=("arbitrary",),                     # reduction axis
            vmem_limit_bytes=48 * 1024 * 1024,
        ),
        cost_estimate=cost,
    )(x2d, fc_w_rep, b_sel, gamma, beta, W_all, b_all)

    # ---- slice the lane-dense result back into the 4 heads (outside kernel) ----
    o0, o1, o2 = C_in, C_in + C_out, C_in + C_out + KK
    channel_attention = out_padded[:, :o0].reshape(B, C_in, 1, 1)
    filter_attention = out_padded[:, o0:o1].reshape(B, C_out, 1, 1)
    spatial_attention = out_padded[:, o1:o2].reshape(B, 1, 1, 1,
                                                     kernel_size, kernel_size)
    kernel_attention = out_padded[:, o2:o2 + K].reshape(B, K, 1, 1, 1, 1)
    return channel_attention, filter_attention, spatial_attention, kernel_attention


def make_params(key, in_planes, out_planes, kernel_size, kernel_num,
                reduction=0.0625, min_channel=16):
    """Deterministic init mirroring _initialize_weights (kaiming fan_out,
    biases=0, BN gamma=1 / beta=0). Weights stored as (in_features, out_features)."""
    A = max(int(in_planes * reduction), min_channel)
    keys = jax.random.split(key, 5)

    def kaiming_fan_out(k, out_f, in_f):
        # 1x1 conv: fan_out = out_channels; std = sqrt(2 / fan_out)
        std = np.sqrt(2.0 / out_f)
        w = jax.random.normal(k, (out_f, in_f), jnp.float32) * std
        return w.T  # store as (in_features, out_features)

    fc_w = kaiming_fan_out(keys[0], A, in_planes)            # (C_in, A)
    gamma = jnp.ones((1, A), jnp.float32)
    beta = jnp.zeros((1, A), jnp.float32)
    cw = kaiming_fan_out(keys[1], in_planes, A)               # (A, C_in)
    cb = jnp.zeros((1, in_planes), jnp.float32)
    fw = kaiming_fan_out(keys[2], out_planes, A)              # (A, C_out)
    fb = jnp.zeros((1, out_planes), jnp.float32)
    sw = kaiming_fan_out(keys[3], kernel_size * kernel_size, A)
    sb = jnp.zeros((1, kernel_size * kernel_size), jnp.float32)
    kw = kaiming_fan_out(keys[4], kernel_num, A)
    kb = jnp.zeros((1, kernel_num), jnp.float32)
    return (fc_w, gamma, beta, cw, cb, fw, fb, sw, sb, kw, kb)


def _reference(x, params, kernel_size, kernel_num):
    """Pure-JAX reference of the forward pass (same math, no Pallas)."""
    (fc_w, gamma, beta, cw, cb, fw, fb, sw, sb, kw, kb) = params
    B = x.shape[0]
    pooled = jnp.mean(x, axis=(2, 3))                    # (B, C_in)
    y = pooled @ fc_w                                    # (B, A)
    mu = jnp.mean(y, axis=0, keepdims=True)
    var = jnp.mean((y - mu) ** 2, axis=0, keepdims=True)
    y = (y - mu) / jnp.sqrt(var + BN_EPS) * gamma + beta
    y = jnp.maximum(y, 0.0)
    chan = jax.nn.sigmoid((y @ cw + cb) / TEMPERATURE)
    filt = jax.nn.sigmoid((y @ fw + fb) / TEMPERATURE)
    spat = jax.nn.sigmoid((y @ sw + sb) / TEMPERATURE)
    kern = jax.nn.softmax((y @ kw + kb) / TEMPERATURE, axis=-1)
    return (chan.reshape(B, -1, 1, 1),
            filt.reshape(B, -1, 1, 1),
            spat.reshape(B, 1, 1, 1, kernel_size, kernel_size),
            kern.reshape(B, -1, 1, 1, 1, 1))


if __name__ == "__main__":
    # Module configuration (small, consistent with the PyTorch __init__)
    B, in_planes, out_planes = 2, 4, 8
    kernel_size, kernel_num = 3, 4
    H = W = 16

    key = jax.random.PRNGKey(0)
    kx, kp = jax.random.split(key)
    x = jax.random.normal(kx, (B, in_planes, H, W), jnp.float32)
    params = make_params(kp, in_planes, out_planes, kernel_size, kernel_num)

    # hw_tile=128 -> HW=256 gives a 2-step grid, exercising init/accumulate/finalize.
    fn = jax.jit(functools.partial(adaptive_attention_unit,
                                   kernel_size=kernel_size,
                                   kernel_num=kernel_num,
                                   hw_tile=128))
    outs = jax.block_until_ready(fn(x, params))

    refs = _reference(x, params, kernel_size, kernel_num)
    # sigmoid heads are exact up to f32 rounding; the kernel (softmax) head uses
    # the approximate EUP reciprocal, so it gets a slightly looser tolerance.
    tols = [(1e-4, 1e-4), (1e-4, 1e-4), (1e-4, 1e-4), (3e-3, 3e-3)]
    for o, r, (rt, at) in zip(outs, refs, tols):
        assert o.shape == r.shape, (o.shape, r.shape)
        np.testing.assert_allclose(np.asarray(o), np.asarray(r), rtol=rt, atol=at)

    print("KERNEL_OK")
</pallas_src>

<mosaic_0001>
module attributes {stable_mosaic.version = 11 : i64} {
  func.func @_aau_kernel(%arg0: i32, %arg1: memref<8x128xf32, #tpu.memory_space<vmem>>, %arg2: memref<8x16xf32, #tpu.memory_space<vmem>>, %arg3: memref<2x8xf32, #tpu.memory_space<vmem>>, %arg4: memref<1x16xf32, #tpu.memory_space<vmem>>, %arg5: memref<1x16xf32, #tpu.memory_space<vmem>>, %arg6: memref<16x128xf32, #tpu.memory_space<vmem>>, %arg7: memref<1x128xf32, #tpu.memory_space<vmem>>, %arg8: memref<2x128xf32, #tpu.memory_space<vmem>>, %arg9: memref<8x1xf32, #tpu.memory_space<vmem>>) attributes {dimension_semantics = [#tpu.dimension_semantics<arbitrary>], iteration_bounds = array<i64: 2>, scalar_prefetch = 0 : i64, scratch_operands = 1 : i64, tpu.core_type = #tpu.core_type<tc>, window_params = [{transform_indices = @transform_0, window_bounds = array<i64: 8, 128>}, {pipeline_mode = #tpu.pipeline_mode<synchronous>, transform_indices = @transform_1, window_bounds = array<i64: 8, 16>}, {pipeline_mode = #tpu.pipeline_mode<synchronous>, transform_indices = @transform_2, window_bounds = array<i64: 2, 8>}, {pipeline_mode = #tpu.pipeline_mode<synchronous>, transform_indices = @transform_3, window_bounds = array<i64: 1, 16>}, {pipeline_mode = #tpu.pipeline_mode<synchronous>, transform_indices = @transform_4, window_bounds = array<i64: 1, 16>}, {pipeline_mode = #tpu.pipeline_mode<synchronous>, transform_indices = @transform_5, window_bounds = array<i64: 16, 128>}, {pipeline_mode = #tpu.pipeline_mode<synchronous>, transform_indices = @transform_6, window_bounds = array<i64: 1, 128>}, {pipeline_mode = #tpu.pipeline_mode<synchronous>, transform_indices = @transform_7, window_bounds = array<i64: 2, 128>}]} {
    %c0_i32 = arith.constant 0 : i32
    %0 = arith.cmpi eq, %arg0, %c0_i32 : i32
    %1 = arith.extui %0 : i1 to i32
    %c0_i32_0 = arith.constant 0 : i32
    %2 = arith.cmpi ne, %1, %c0_i32_0 : i32
    scf.if %2 {
      %cst_7 = arith.constant 0.000000e+00 : f32
      %12 = vector.broadcast %cst_7 : f32 to vector<8x1xf32>
      %c0_8 = arith.constant 0 : index
      %c0_9 = arith.constant 0 : index
      %13 = vector.load %arg9[%c0_8, %c0_9] : memref<8x1xf32, #tpu.memory_space<vmem>>, vector<8x1xf32>
      tpu.vector_store %arg9[%c0_8, %c0_9], %12 {strides = array<i32>} : memref<8x1xf32, #tpu.memory_space<vmem>>, vector<8x1xf32>,
    } else {
    }
    %c0 = arith.constant 0 : index
    %c0_1 = arith.constant 0 : index
    %3 = vector.load %arg1[%c0, %c0_1] : memref<8x128xf32, #tpu.memory_space<vmem>>, vector<8x128xf32>
    %c0_2 = arith.constant 0 : index
    %c0_3 = arith.constant 0 : index
    %4 = vector.load %arg9[%c0_2, %c0_3] : memref<8x1xf32, #tpu.memory_space<vmem>>, vector<8x1xf32>
    %cst = arith.constant dense<0.000000e+00> : vector<8xf32>
    %5 = vector.multi_reduction <add>, %3, %cst [1] : vector<8x128xf32> to vector<8xf32>
    %6 = vector.shape_cast %5 : vector<8xf32> to vector<8x1xf32>
    %7 = arith.addf %4, %6 : vector<8x1xf32>
    %c0_4 = arith.constant 0 : index
    %c0_5 = arith.constant 0 : index
    %8 = vector.load %arg9[%c0_4, %c0_5] : memref<8x1xf32, #tpu.memory_space<vmem>>, vector<8x1xf32>
    tpu.vector_store %arg9[%c0_4, %c0_5], %7 {strides = array<i32>} : memref<8x1xf32, #tpu.memory_space<vmem>>, vector<8x1xf32>,
    %c1_i32 = arith.constant 1 : i32
    %9 = arith.cmpi eq, %arg0, %c1_i32 : i32
    %10 = arith.extui %9 : i1 to i32
    %c0_i32_6 = arith.constant 0 : i32
    %11 = arith.cmpi ne, %10, %c0_i32_6 : i32
    scf.if %11 {
      %c0_7 = arith.constant 0 : index
      %c0_8 = arith.constant 0 : index
      %12 = vector.load %arg9[%c0_7, %c0_8] : memref<8x1xf32, #tpu.memory_space<vmem>>, vector<8x1xf32>
      %cst_9 = arith.constant 3.906250e-03 : f32
      %13 = vector.broadcast %cst_9 : f32 to vector<8x1xf32>
      %14 = arith.mulf %12, %13 : vector<8x1xf32>
      %c0_10 = arith.constant 0 : index
      %c0_11 = arith.constant 0 : index
      %15 = vector.load %arg3[%c0_10, %c0_11] : memref<2x8xf32, #tpu.memory_space<vmem>>, vector<2x8xf32>
      %c0_12 = arith.constant 0 : index
      %c0_13 = arith.constant 0 : index
      %16 = vector.load %arg2[%c0_12, %c0_13] : memref<8x16xf32, #tpu.memory_space<vmem>>, vector<8x16xf32>
      %17 = vector.broadcast %14 : vector<8x1xf32> to vector<8x16xf32>
      %18 = arith.mulf %17, %16 : vector<8x16xf32>
      %cst_14 = arith.constant dense<0.000000e+00> : vector<2x16xf32>
      %19 = tpu.matmul %15, %18, %cst_14 {dimension_numbers = #tpu.dot_dimension_numbers<[1], [0], [0], [1], [0, 0, 1, 1], [], []>} : vector<2x8xf32>, vector<8x16xf32>, vector<2x16xf32> -> vector<2x16xf32>
      %cst_15 = arith.constant dense<0.000000e+00> : vector<16xf32>
      %20 = vector.multi_reduction <add>, %19, %cst_15 [0] : vector<2x16xf32> to vector<16xf32>
      %21 = vector.shape_cast %20 : vector<16xf32> to vector<1x16xf32>
      %cst_16 = arith.constant 2.000000e+00 : f32
      %22 = vector.broadcast %cst_16 : f32 to vector<1x16xf32>
      %23 = arith.divf %21, %22 : vector<1x16xf32>
      %24 = vector.broadcast %23 : vector<1x16xf32> to vector<2x16xf32>
      %25 = arith.subf %19, %24 : vector<2x16xf32>
      %26 = vector.broadcast %23 : vector<1x16xf32> to vector<2x16xf32>
      %27 = arith.subf %19, %26 : vector<2x16xf32>
      %28 = arith.mulf %25, %27 : vector<2x16xf32>
      %cst_17 = arith.constant dense<0.000000e+00> : vector<16xf32>
      %29 = vector.multi_reduction <add>, %28, %cst_17 [0] : vector<2x16xf32> to vector<16xf32>
      %30 = vector.shape_cast %29 : vector<16xf32> to vector<1x16xf32>
      %cst_18 = arith.constant 2.000000e+00 : f32
      %31 = vector.broadcast %cst_18 : f32 to vector<1x16xf32>
      %32 = arith.divf %30, %31 : vector<1x16xf32>
      %33 = vector.broadcast %23 : vector<1x16xf32> to vector<2x16xf32>
      %34 = arith.subf %19, %33 : vector<2x16xf32>
      %cst_19 = arith.constant 9.99999974E-6 : f32
      %35 = vector.broadcast %cst_19 : f32 to vector<1x16xf32>
      %36 = arith.addf %32, %35 : vector<1x16xf32>
      %37 = math.rsqrt %36 : vector<1x16xf32>
      %38 = vector.broadcast %37 : vector<1x16xf32> to vector<2x16xf32>
      %39 = arith.mulf %34, %38 : vector<2x16xf32>
      %c0_20 = arith.constant 0 : index
      %c0_21 = arith.constant 0 : index
      %40 = vector.load %arg4[%c0_20, %c0_21] : memref<1x16xf32, #tpu.memory_space<vmem>>, vector<1x16xf32>
      %41 = vector.broadcast %40 : vector<1x16xf32> to vector<2x16xf32>
      %42 = arith.mulf %39, %41 : vector<2x16xf32>
      %c0_22 = arith.constant 0 : index
      %c0_23 = arith.constant 0 : index
      %43 = vector.load %arg5[%c0_22, %c0_23] : memref<1x16xf32, #tpu.memory_space<vmem>>, vector<1x16xf32>
      %44 = vector.broadcast %43 : vector<1x16xf32> to vector<2x16xf32>
      %45 = arith.addf %42, %44 : vector<2x16xf32>
      %cst_24 = arith.constant 0.000000e+00 : f32
      %46 = vector.broadcast %cst_24 : f32 to vector<2x16xf32>
      %47 = arith.maximumf %45, %46 : vector<2x16xf32>
      %c0_25 = arith.constant 0 : index
      %c0_26 = arith.constant 0 : index
      %48 = vector.load %arg6[%c0_25, %c0_26] : memref<16x128xf32, #tpu.memory_space<vmem>>, vector<16x128xf32>
      %cst_27 = arith.constant dense<0.000000e+00> : vector<2x128xf32>
      %49 = tpu.matmul %47, %48, %cst_27 {dimension_numbers = #tpu.dot_dimension_numbers<[1], [0], [0], [1], [0, 0, 1, 1], [], []>} : vector<2x16xf32>, vector<16x128xf32>, vector<2x128xf32> -> vector<2x128xf32>
      %c0_28 = arith.constant 0 : index
      %c0_29 = arith.constant 0 : index
      %50 = vector.load %arg7[%c0_28, %c0_29] : memref<1x128xf32, #tpu.memory_space<vmem>>, vector<1x128xf32>
      %51 = vector.broadcast %50 : vector<1x128xf32> to vector<2x128xf32>
      %52 = arith.addf %49, %51 : vector<2x128xf32>
      %cst_30 = arith.constant 1.000000e+00 : f32
      %53 = vector.broadcast %cst_30 : f32 to vector<2x128xf32>
      %54 = arith.mulf %52, %53 : vector<2x128xf32>
      %55 = arith.negf %54 : vector<2x128xf32>
      %56 = math.exp %55 : vector<2x128xf32>
      %cst_31 = arith.constant 1.000000e+00 : f32
      %57 = vector.broadcast %cst_31 : f32 to vector<2x128xf32>
      %58 = arith.addf %57, %56 : vector<2x128xf32>
      %59 = arith.divf %57, %58 : vector<2x128xf32>
      %60 = tpu.iota {dimensions = array<i32: 1>} : vector<2x128xi32>
      %c21_i32 = arith.constant 21 : i32
      %61 = vector.broadcast %c21_i32 : i32 to vector<2x128xi32>
      %62 = arith.cmpi sge, %60, %61 : vector<2x128xi32>
      %c25_i32 = arith.constant 25 : i32
      %63 = vector.broadcast %c25_i32 : i32 to vector<2x128xi32>
      %64 = arith.cmpi slt, %60, %63 : vector<2x128xi32>
      %65 = arith.andi %62, %64 : vector<2x128xi1>
      %cst_32 = arith.constant -1.000000e+30 : f32
      %66 = vector.broadcast %cst_32 : f32 to vector<2x128xf32>
      %67 = arith.select %65, %54, %66 : vector<2x128xi1>, vector<2x128xf32>
      %cst_33 = arith.constant dense<0xFF800000> : vector<2xf32>
      %68 = vector.multi_reduction <maximumf>, %67, %cst_33 [1] : vector<2x128xf32> to vector<2xf32>
      %69 = vector.shape_cast %68 : vector<2xf32> to vector<2x1xf32>
      %70 = vector.broadcast %69 : vector<2x1xf32> to vector<2x128xf32>
      %71 = arith.subf %67, %70 : vector<2x128xf32>
      %72 = math.exp %71 : vector<2x128xf32>
      %cst_34 = arith.constant dense<0.000000e+00> : vector<2xf32>
      %73 = vector.multi_reduction <add>, %72, %cst_34 [1] : vector<2x128xf32> to vector<2xf32>
      %74 = vector.shape_cast %73 : vector<2xf32> to vector<2x1xf32>
      %75 = tpu.reciprocal %74 {approx = true} : vector<2x1xf32> -> vector<2x1xf32>
      %76 = vector.broadcast %75 : vector<2x1xf32> to vector<2x128xf32>
      %77 = arith.mulf %72, %76 : vector<2x128xf32>
      %78 = arith.select %65, %77, %59 : vector<2x128xi1>, vector<2x128xf32>
      %c0_35 = arith.constant 0 : index
      %c0_36 = arith.constant 0 : index
      %79 = vector.load %arg8[%c0_35, %c0_36] : memref<2x128xf32, #tpu.memory_space<vmem>>, vector<2x128xf32>
      tpu.vector_store %arg8[%c0_35, %c0_36], %78 {strides = array<i32>} : memref<2x128xf32, #tpu.memory_space<vmem>>, vector<2x128xf32>,
    } else {
    }
    return
  }
  func.func @transform_0(%arg0: i32) -> (i32, i32) {
    %c0_i32 = arith.constant 0 : i32
    %c0_i32_0 = arith.constant 0 : i32
    return %c0_i32, %arg0 : i32, i32
  }
  func.func @transform_1(%arg0: i32) -> (i32, i32) {
    %c0_i32 = arith.constant 0 : i32
    %c0_i32_0 = arith.constant 0 : i32
    %c0_i32_1 = arith.constant 0 : i32
    return %c0_i32, %c0_i32_0 : i32, i32
  }
  func.func @transform_2(%arg0: i32) -> (i32, i32) {
    %c0_i32 = arith.constant 0 : i32
    %c0_i32_0 = arith.constant 0 : i32
    %c0_i32_1 = arith.constant 0 : i32
    return %c0_i32, %c0_i32_0 : i32, i32
  }
  func.func @transform_3(%arg0: i32) -> (i32, i32) {
    %c0_i32 = arith.constant 0 : i32
    %c0_i32_0 = arith.constant 0 : i32
    %c0_i32_1 = arith.constant 0 : i32
    return %c0_i32, %c0_i32_0 : i32, i32
  }
  func.func @transform_4(%arg0: i32) -> (i32, i32) {
    %c0_i32 = arith.constant 0 : i32
    %c0_i32_0 = arith.constant 0 : i32
    %c0_i32_1 = arith.constant 0 : i32
    return %c0_i32, %c0_i32_0 : i32, i32
  }
  func.func @transform_5(%arg0: i32) -> (i32, i32) {
    %c0_i32 = arith.constant 0 : i32
    %c0_i32_0 = arith.constant 0 : i32
    %c0_i32_1 = arith.constant 0 : i32
    return %c0_i32, %c0_i32_0 : i32, i32
  }
  func.func @transform_6(%arg0: i32) -> (i32, i32) {
    %c0_i32 = arith.constant 0 : i32
    %c0_i32_0 = arith.constant 0 : i32
    %c0_i32_1 = arith.constant 0 : i32
    return %c0_i32, %c0_i32_0 : i32, i32
  }
  func.func @transform_7(%arg0: i32) -> (i32, i32) {
    %c0_i32 = arith.constant 0 : i32
    %c0_i32_0 = arith.constant 0 : i32
    %c0_i32_1 = arith.constant 0 : i32
    return %c0_i32, %c0_i32_0 : i32, i32
  }
}

</mosaic_0001>

<bundles_post_ra>
// kernel: adaptive_attention_unit.1
= control target key start
LH: loop header
LB: loop body
LE: loop exit
PB: predicated region body
PF: predicated region fallthrough
CT: control target
= control target key end

     0   :  { %s651_s24 = smov 0   ;;  %s697_s0 = inlined_call_operand.vmem [shape: f32[8,256], index: 0, kind: input, shape index: {}]   ;;  %s698_s1 = inlined_call_operand.vmem [shape: f32[8,16], index: 1, kind: input, shape index: {}]   ;;  %s699_s2 = inlined_call_operand.vmem [shape: f32[2,8], index: 2, kind: input, shape index: {}]   ;;  %s700_s3 = inlined_call_operand.vmem [shape: f32[1,16], index: 3, kind: input, shape index: {}]   ;;  %s701_s4 = inlined_call_operand.vmem [shape: f32[1,16], index: 4, kind: input, shape index: {}]   ;;  %s702_s5 = inlined_call_operand.vmem [shape: f32[16,128], index: 5, kind: input, shape index: {}]   ;;  %s703_s6 = inlined_call_operand.vmem [shape: f32[1,128], index: 6, kind: input, shape index: {}]   ;;  %s704_s7 = inlined_call_operand.vmem [shape: f32[2,128], index: 7, kind: output, shape index: {}]  }
   0x1 LB: > { %s539_s25 = sadd.s32 4294967295, %s604_s24   ;;  %p542_p0 = scmp.ge.s32.totalorder %s604_s24, 1  ;;  %s604_s24 = sphi %s651_s24, %s17_s24  }
   0x2   : > { %p231_p1 = scmp.lt.s32.totalorder %s604_s24, 3 }
   0x4   : > { %p232_p2 = pnand %p542_p0, %p231_p1 }
   0x5   : > { %p257_p3 = scmp.lt.s32.totalorder (!%p232_p2), %s539_s25, 1  ;;  %p544_p4 = scmp.ne.s32.totalorder (!%p232_p2), %s539_s25, 0 }
   0x6   : > { %235 = sbr.rel (%p232_p2) target bundleno = 1105 (0x451), region = 48 }
   0xd   : > { %s258_s26 = scalar_select %p257_p3, %s539_s25, 1 }
   0xe   : > { %264 = sbr.rel (%p544_p4) target bundleno = 21 (0x15), region = 52  ;;  %vm265_vm0 = vcmask (!%p544_p4), 7168   ;;  %v606_v0 = vmov (!%p544_p4), 0.0  }
   0xf   : > { %s543_s27 = sshll.u32 %s258_s26, 3  ;;  %266 = vst.msk [vmem:[#allocation2] sm:$0xff] (!%p544_p4), %vm265_vm0, %v606_v0 }
  0x10   : > { %s260_s30 = scalar_lea.vmem %s697_s0, %s543_s27 }
  0x15 PF: > { %v267_v1 = vld [vmem:[%s260_s30] sm:$0xff]  ;;  %vm272_vm1 = vcmask 7168   ;;  %p545_p5 = scmp.ne.s32.totalorder %s539_s25, 1 }
  0x16   : > { %269 = vadd.xlane.f32.xlu0 %v267_v1  ;;  %v268_v2 = vld [vmem:[#allocation2] sm:$0xff]  ;;  %v607_v6 = vmov (!%p545_p5), 0   ;;  %v608_v8 = vmov (!%p545_p5), 0.0   ;;  %vm609_vm2 = vmmov (!%p545_p5), 0   ;;  %vm288_vm3 = vcmask (!%p545_p5), 64512   ;;  %v403_v14 = vld [vmem:[%s702_s5 + $0x8] sm:$0xff] (!%p545_p5) }
  0x17   : > { %587 = vset.pattern.permute.xlu0 (!%p545_p5), %v607_v6  ;;  %559 = vmatprep.subr.mxu0 (!%p545_p5), %v608_v8  ;;  %v281_v9 = vld [vmem:[%s698_s1] sm:$0xff] (!%p545_p5)  ;;  %v610_v16 = vmov (!%p545_p5), 0.0|0.0   ;;  %vm362_vm4 = vcmask (!%p545_p5), 123904   ;;  %vm411_vm5 = vcmask (!%p545_p5), 130048   ;;  %v491_v45 = vlaneseq (!%p545_p5) }
  0x18   : > { %561 = vmatprep.mubr.msk.f32.mxu0 (!%p545_p5), %vm609_vm2, %v608_v8  ;;  %568 = vmatprep.mubr.msk.f32.mxu1 (!%p545_p5), %vm609_vm2, %v608_v8  ;;  %v280_v12 = vld [vmem:[%s699_s2] sm:$0x3] (!%p545_p5)  ;;  %vm497_vm9 = vcmask (!%p545_p5), 1041408  }
  0x19   : > { %v402_v13 = vld [vmem:[%s702_s5] sm:$0xff] (!%p545_p5)  ;;  %571 = vmatprep.subr.bf16.mxu1 (!%p545_p5), %v610_v16  ;;  %v492_v46 = vand.u32 (!%p545_p5), 127, %v491_v45 }
  0x1a   : > { %v572_v15 = vpack.c.bf16 (!%p545_p5), %v403_v14, %v402_v13  ;;  %v547_v39 = vld [vmem:[%s700_s3] ss:$0 sm:$0xff] (!%p545_p5) }
  0x1b   : > { %v548_v41 = vld [vmem:[%s701_s4] ss:$0 sm:$0xff] (!%p545_p5)  ;;  %vm493_vm6 = vcmp.ge.s32.totalorder (!%p545_p5), %v492_v46, 21  ;;  %vm494_vm7 = vcmp.lt.s32.totalorder (!%p545_p5), %v492_v46, 25 }
  0x1c   : > { %573 = vmatpush3.bf16.msra.mxu1 (!%p545_p5), %v572_v15  ;;  %v549_v47 = vld [vmem:[%s703_s6] ss:$0 sm:$0xff] (!%p545_p5)  ;;  %vm683_vm8 = vmand (!%p545_p5), %vm493_vm6, %vm494_vm7 }
  0xa0   : > { %277 = sbr.rel (%p545_p5) target bundleno = 1105 (0x451), region = 56 }
  0xa3   : > { %v270_v3 = vpop.xlane.xlu0 %269 }
  0xa4   : > { %v271_v4 = vadd.f32 %v270_v3, %v268_v2 }
  0xa6   : > { %273 = vst.msk [vmem:[#allocation2] sm:$0xff] %vm272_vm1, %v271_v4 }
  0xad   : > { %v278_v5 = vld [vmem:[#allocation2] sm:$0xff] }
  0xae   : > { %v279_v7 = vmul.f32 0.00390625, %v278_v5 }
  0xb0   : > { %284 = vperm.xlu0 %587, %v279_v7  }
 0x12f   : > { %v285_v10 = vpop.permute.xlu0 %284 }
 0x130   : > { %v287_v11 = vmul.f32 %v285_v10, %v281_v9 }
 0x132   : > { %560 = vmatpush3.msra.mxu0 %v287_v11 }
 0x133   : > { %562 = vmatmul.mubr.msk.f32.vlgmr.msra.gmra.mrb[0].mxu0 %vm288_vm3, %v280_v12 }
 0x206   : > { %v358_v17 = vpop.f32.mrb[0].mxu0 }
 0x207   : > { %v363_v18 = vsel %vm362_vm4, %v358_v17, 0.0  ;;  %v563_v19 = vpop.f32.mrb[1].mxu0 }
 0x208   : > { %v364_v20 = vrot.slane %v363_v18, 4 }
 0x20a   : > { %v365_v21 = vadd.f32 %v364_v20, %v363_v18 }
 0x20c   : > { %v366_v22 = vrot.slane %v365_v21, 2 }
 0x20e   : > { %v367_v23 = vadd.f32 %v366_v22, %v365_v21 }
 0x210   : > { %v368_v24 = vrot.slane %v367_v23, 1 }
 0x212   : > { %v369_v25 = vadd.f32 %v368_v24, %v367_v23 }
 0x214   : > { %v371_v26 = vmul.f32 0.5, %v369_v25 }
 0x216   : > { %v372_v27 = vsub.f32 %v358_v17, %v371_v26 }
 0x218   : > { %v373_v28 = vmul.f32 %v372_v27, %v372_v27 }
 0x21a   : > { %v374_v29 = vsel %vm362_vm4, %v373_v28, 0.0 }
 0x21b   : > { %v375_v30 = vrot.slane %v374_v29, 4 }
 0x21d   : > { %v376_v31 = vadd.f32 %v375_v30, %v374_v29 }
 0x21f   : > { %v377_v32 = vrot.slane %v376_v31, 2 }
 0x221   : > { %v378_v33 = vadd.f32 %v377_v32, %v376_v31 }
 0x223   : > { %v379_v34 = vrot.slane %v378_v33, 1 }
 0x225   : > { %v380_v35 = vadd.f32 %v379_v34, %v378_v33 }
 0x227   : > { %v381_v36 = vmul.f32 0.5, %v380_v35 }
 0x229   : > { %v382_v37 = vadd.f32 1e-05, %v381_v36 }
 0x22b   : > { %588 = vrsqrt.f32 %v382_v37 }
 0x235   : > { %v589_v38 = vpop.eup %588 }
 0x236   : > { %v384_v40 = vmul.f32 %v589_v38, %v372_v27 }
 0x238   : > { %v392_v42 = vmul.f32 %v547_v39, %v384_v40 }
 0x23a   : > { %v400_v43 = vadd.f32 %v548_v41, %v392_v42 }
 0x23c   : > { %v401_v44 = vmax.f32 %v400_v43, 0.0 }
 0x23e   : > { %569 = vmatmul.mubr.msk.f32.vlgmr.msra.gmra.mrb[0].mxu1 %vm411_vm5, %v401_v44 }
 0x311   : > { %v481_v48 = vpop.f32.mrb[0].mxu1 }
 0x312   : > { %v482_v50 = vadd.f32 %v549_v47, %v481_v48  ;;  %v570_v51 = vpop.f32.mrb[1].mxu1 }
 0x314   : > { %v496_v52 = vsel %vm683_vm8, %v482_v50, -1e+30  ;;  %v551_v59 = vmul.f32 -1.442695, %v482_v50 }
 0x315   : > { %v498_v53 = vsel %vm497_vm9, %v496_v52, -inf }
 0x316   : > { %499 = vmax.xlane.f32.xlu0 %v498_v53 }
 0x3a3   : > { %v500_v54 = vpop.xlane.xlu0 %499 }
 0x3a4   : > { %v501_v55 = vsub.f32 %v496_v52, %v500_v54 }
 0x3a6   : > { %v502_v56 = vmul.f32 1.442695, %v501_v55 }
 0x3a8   : > { %590 = vpow2.f32 %v502_v56 }
 0x3a9   : > { %592 = vpow2.f32 %v551_v59 }
 0x3b2   : > { %v591_v57 = vpop.eup %590 }
 0x3b3   : > { %v504_v58 = vsel %vm497_vm9, %v591_v57, 0.0  ;;  %v593_v60 = vpop.eup %592 }
 0x3b4   : > { %505 = vadd.xlane.f32.xlu1 %v504_v58  ;;  %v488_v61 = vadd.f32 1.0, %v593_v60 }
 0x441   : > { %v506_v62 = vpop.xlane.xlu1 %505 }
 0x442   : > { %594 = vrcp.f32 %v506_v62 }
 0x443   : > { %596 = vrcp.f32 %v488_v61 }
 0x44c   : > { %v595_v63 = vpop.eup %594 }
 0x44d   : > { %v508_v0 = vmul.f32 %v595_v63, %v591_v57  ;;  %v597_v1 = vpop.eup %596 }
 0x44f   : > { %v509_v2 = vsel %vm683_vm8, %v508_v0, %v597_v1 }
 0x450   : > { %510 = vst [vmem:[%s704_s7] sm:$0x3] %v509_v2 }
 0x451 PF: > { %s17_s24 = sadd.s32 1, %s604_s24  }
 0x452   : > { %p14_p6 = scmp.ge.s32.totalorder %s17_s24, 4  }
 0x454   :  { %16 = sbr.rel (!%p14_p6) target bundleno = 1 (0x1), region = 82 }

</bundles_post_ra>
